<compile_context>
chip_gen: v7x
topology: tpu7x:2x2x1
jax: 0.10.0
libtpu: 0.0.40
codegen_flags: <defaults>
</compile_context>

<pallas_src>
import jax
import jax.numpy as jnp
from jax import lax
from jax.experimental import pallas as pl
from jax.experimental.pallas import tpu as pltpu


def _round_up(x, m):
    return ((x + m - 1) // m) * m


def deeprock_kernel(x_ref, w1t_ref, b1_ref, w2_ref, b2_ref, o_ref):
    x = x_ref[...]                                           # (TN, 2p)

    # h^T (H_pad, TN) = W1_big^T @ x^T: contract the shared 2p axis (the lane
    # dim of both operands).  Keeps the batch on the lane axis from here on.
    h = lax.dot_general(
        w1t_ref[...], x, (((1,), (1,)), ((), ())),
        preferred_element_type=jnp.float32)                  # (H_pad, TN)
    h = h + b1_ref[...]                                      # + (H_pad, 1) bias

    # ELU(alpha=1): h if h>0 else exp(h)-1.  Single EUP transcendental;
    # clamped argument so no inf/overflow is ever produced.
    hn = jnp.minimum(h, 0.0)
    h = jnp.where(h > 0.0, h, jnp.exp(hn) - 1.0)             # (H_pad, TN)

    # Final Linear(H -> 1) as a standard lane-dense matmul: (1, H) @ (H, TN).
    out_row = lax.dot_general(
        w2_ref[...], h, (((1,), (0,)), ((), ())),
        preferred_element_type=jnp.float32)                  # (1, TN)
    o_ref[...] = (out_row + b2_ref[...]).astype(o_ref.dtype)


def deeprock_forward(x, z, w1, b1, w2, b2, *, block_n=8192, stream_dtype=None):
    """DeepROCK forward.

    x  : (N, 2p)  float32 (or bf16)   original features + knockoffs
    z  : (1, 2p)  float32             Z_weight
    w1 : (p, H)   float32             Linear(p, H).weight, transposed
    b1 : (1, H)   float32
    w2 : (H, 1)   float32             Linear(H, 1).weight, transposed
    b2 : (1, 1)   float32
    returns (N, 1) float32
    """
    n, two_p = x.shape
    p = two_p // 2
    hidden = w1.shape[1]

    # ---- Fold Z_weight + knockoff fold into an effective (2p, H) weight ----
    # W1_big[j, :] = z[j] * W1[j % p, :]; exact reformulation of
    # (z*x)[:, :p] + (z*x)[:, p:] followed by the Linear(p, H).
    z = z.astype(jnp.float32).reshape(two_p, 1)
    w1_big = jnp.concatenate([w1, w1], axis=0).astype(jnp.float32) * z  # (2p, H)

    # Pad hidden units to the minimal full 128-lane tile (exact no-op: padded
    # pre-activations are 0, ELU(0)=0, padded W2 rows are 0).
    h_pad = _round_up(max(hidden, 128), 128)
    if h_pad != hidden:
        w1_big = jnp.pad(w1_big, ((0, 0), (0, h_pad - hidden)))
        b1 = jnp.pad(b1, ((0, 0), (0, h_pad - hidden)))
        w2 = jnp.pad(w2, ((0, h_pad - hidden), (0, 0)))

    w1t = jnp.transpose(w1_big).astype(jnp.float32)          # (H_pad, 2p)
    b1_col = b1.astype(jnp.float32).reshape(h_pad, 1)         # (H_pad, 1)
    w2_row = w2.astype(jnp.float32).reshape(1, h_pad)          # (1, H_pad)
    b2 = b2.astype(jnp.float32).reshape(1, 1)

    # ---- Batch tiling --------------------------------------------------
    # Multiple of 128 so the (1, TN) output rows are full-lane unmasked
    # stores; large to amortize grid-step overhead, but capped so there are
    # at least two grid steps (v7x megacore) when N allows it.
    tn = max(128, (int(block_n) // 128) * 128)
    if n > 128:
        tn = min(tn, _round_up(pl.cdiv(n, 2), 128))
    tn = min(tn, _round_up(n, 128))
    n_pad = _round_up(n, tn)
    if n_pad != n:
        x = jnp.pad(x, ((0, n_pad - n), (0, 0)))
    num_tiles = n_pad // tn

    if stream_dtype is not None:
        # bf16 streaming: X feeds the MXU directly (f32 accumulation).
        x = x.astype(stream_dtype)
        w1t = w1t.astype(stream_dtype)

    cost = pl.CostEstimate(
        flops=2 * n_pad * (two_p * h_pad + h_pad),
        transcendentals=n_pad * h_pad,                        # one exp / element
        bytes_accessed=(x.size * x.dtype.itemsize + n_pad * 4
                        + w1t.size * w1t.dtype.itemsize
                        + 4 * (b1_col.size + w2_row.size + b2.size)),
    )

    out = pl.pallas_call(
        deeprock_kernel,
        out_shape=jax.ShapeDtypeStruct((1, n_pad), jnp.float32),
        grid=(num_tiles,),
        in_specs=[
            pl.BlockSpec((tn, two_p), lambda i: (i, 0)),      # X: streamed tiles
            pl.BlockSpec((h_pad, two_p), lambda i: (0, 0)),   # W1_big^T: resident
            pl.BlockSpec((h_pad, 1), lambda i: (0, 0)),       # b1 column: resident
            pl.BlockSpec((1, h_pad), lambda i: (0, 0)),       # W2 row: resident
            pl.BlockSpec((1, 1), lambda i: (0, 0)),           # b2: resident
        ],
        out_specs=pl.BlockSpec((1, tn), lambda i: (0, i)),    # lane-dense rows
        compiler_params=pltpu.CompilerParams(
            dimension_semantics=("parallel",),
            vmem_limit_bytes=48 * 1024 * 1024,
        ),
        cost_estimate=cost,
    )(x, w1t, b1_col, w2_row, b2)

    # (1, N_pad) slab -> (N, 1) column, dropping padded rows.
    return out.reshape(n_pad, 1)[:n]


def reference_forward(x, z, w1, b1, w2, b2, p):
    x_pink = x * z
    x_mlp = x_pink[:, :p] + x_pink[:, p:]
    h = x_mlp @ w1 + b1
    h = jnp.where(h > 0, h, jnp.expm1(h))
    return h @ w2 + b2


if __name__ == "__main__":
    # Small shapes consistent with DeepROCK(p=16, hidden_dims=[64]).
    p = 16
    hidden = 64
    batch = 200          # deliberately not a multiple of the batch tile

    key = jax.random.PRNGKey(0)
    kx, kz, kw1, kb1, kw2, kb2 = jax.random.split(key, 6)

    # Input: (batch, 2p) — original features concatenated with knockoffs.
    x = jax.random.normal(kx, (batch, 2 * p), dtype=jnp.float32)

    # Z_weight initialises to ones in the module; perturb so the fold into
    # W1_big is genuinely exercised.
    z = 1.0 + 0.1 * jax.random.normal(kz, (1, 2 * p), dtype=jnp.float32)
    w1 = (jax.random.normal(kw1, (p, hidden), dtype=jnp.float32)
          / jnp.sqrt(jnp.float32(p)))
    b1 = 0.01 * jax.random.normal(kb1, (1, hidden), dtype=jnp.float32)
    w2 = (jax.random.normal(kw2, (hidden, 1), dtype=jnp.float32)
          / jnp.sqrt(jnp.float32(hidden)))
    b2 = 0.01 * jax.random.normal(kb2, (1, 1), dtype=jnp.float32)

    # block_n=128 -> 2 batch tiles + padding path exercised at small scale.
    out = deeprock_forward(x, z, w1, b1, w2, b2, block_n=128)
    out = jax.block_until_ready(out)

    ref = reference_forward(x, z, w1, b1, w2, b2, p)
    assert out.shape == (batch, 1), out.shape
    assert jnp.allclose(out, ref, atol=1e-4, rtol=1e-4), (
        float(jnp.max(jnp.abs(out - ref))))

    print("KERNEL_OK")
</pallas_src>

<mosaic_0001>
module attributes {stable_mosaic.version = 11 : i64} {
  func.func @deeprock_kernel(%arg0: i32, %arg1: memref<128x32xf32, #tpu.memory_space<vmem>>, %arg2: memref<128x32xf32, #tpu.memory_space<vmem>>, %arg3: memref<128x1xf32, #tpu.memory_space<vmem>>, %arg4: memref<1x128xf32, #tpu.memory_space<vmem>>, %arg5: memref<1x1xf32, #tpu.memory_space<vmem>>, %arg6: memref<1x128xf32, #tpu.memory_space<vmem>>) attributes {dimension_semantics = [#tpu.dimension_semantics<parallel>], iteration_bounds = array<i64: 2>, scalar_prefetch = 0 : i64, scratch_operands = 0 : i64, tpu.core_type = #tpu.core_type<tc>, window_params = [{transform_indices = @transform_0, window_bounds = array<i64: 128, 32>}, {pipeline_mode = #tpu.pipeline_mode<synchronous>, transform_indices = @transform_1, window_bounds = array<i64: 128, 32>}, {pipeline_mode = #tpu.pipeline_mode<synchronous>, transform_indices = @transform_2, window_bounds = array<i64: 128, 1>}, {pipeline_mode = #tpu.pipeline_mode<synchronous>, transform_indices = @transform_3, window_bounds = array<i64: 1, 128>}, {pipeline_mode = #tpu.pipeline_mode<synchronous>, transform_indices = @transform_4, window_bounds = array<i64: 1, 1>}, {transform_indices = @transform_5, window_bounds = array<i64: 1, 128>}]} {
    %c0 = arith.constant 0 : index
    %c0_0 = arith.constant 0 : index
    %0 = vector.load %arg1[%c0, %c0_0] : memref<128x32xf32, #tpu.memory_space<vmem>>, vector<128x32xf32>
    %c0_1 = arith.constant 0 : index
    %c0_2 = arith.constant 0 : index
    %1 = vector.load %arg2[%c0_1, %c0_2] : memref<128x32xf32, #tpu.memory_space<vmem>>, vector<128x32xf32>
    %cst = arith.constant dense<0.000000e+00> : vector<128x128xf32>
    %2 = tpu.matmul %1, %0, %cst {dimension_numbers = #tpu.dot_dimension_numbers<[1], [1], [0], [0], [0, 0, 1, 0], [], []>} : vector<128x32xf32>, vector<128x32xf32>, vector<128x128xf32> -> vector<128x128xf32>
    %c0_3 = arith.constant 0 : index
    %c0_4 = arith.constant 0 : index
    %3 = vector.load %arg3[%c0_3, %c0_4] : memref<128x1xf32, #tpu.memory_space<vmem>>, vector<128x1xf32>
    %4 = vector.broadcast %3 : vector<128x1xf32> to vector<128x128xf32>
    %5 = arith.addf %2, %4 : vector<128x128xf32>
    %cst_5 = arith.constant 0.000000e+00 : f32
    %6 = vector.broadcast %cst_5 : f32 to vector<128x128xf32>
    %7 = arith.minimumf %5, %6 : vector<128x128xf32>
    %cst_6 = arith.constant 0.000000e+00 : f32
    %8 = vector.broadcast %cst_6 : f32 to vector<128x128xf32>
    %9 = arith.cmpf ogt, %5, %8 : vector<128x128xf32>
    %10 = math.exp %7 : vector<128x128xf32>
    %cst_7 = arith.constant 1.000000e+00 : f32
    %11 = vector.broadcast %cst_7 : f32 to vector<128x128xf32>
    %12 = arith.subf %10, %11 : vector<128x128xf32>
    %13 = arith.select %9, %5, %12 : vector<128x128xi1>, vector<128x128xf32>
    %c0_8 = arith.constant 0 : index
    %c0_9 = arith.constant 0 : index
    %14 = vector.load %arg4[%c0_8, %c0_9] : memref<1x128xf32, #tpu.memory_space<vmem>>, vector<1x128xf32>
    %cst_10 = arith.constant dense<0.000000e+00> : vector<1x128xf32>
    %15 = tpu.matmul %14, %13, %cst_10 {dimension_numbers = #tpu.dot_dimension_numbers<[1], [0], [0], [1], [0, 0, 1, 1], [], []>} : vector<1x128xf32>, vector<128x128xf32>, vector<1x128xf32> -> vector<1x128xf32>
    %c0_11 = arith.constant 0 : index
    %c0_12 = arith.constant 0 : index
    %16 = vector.load %arg5[%c0_11, %c0_12] : memref<1x1xf32, #tpu.memory_space<vmem>>, vector<1x1xf32>
    %17 = vector.broadcast %16 : vector<1x1xf32> to vector<1x128xf32>
    %18 = arith.addf %15, %17 : vector<1x128xf32>
    %c0_13 = arith.constant 0 : index
    %c0_14 = arith.constant 0 : index
    %19 = vector.load %arg6[%c0_13, %c0_14] : memref<1x128xf32, #tpu.memory_space<vmem>>, vector<1x128xf32>
    tpu.vector_store %arg6[%c0_13, %c0_14], %18 {strides = array<i32>} : memref<1x128xf32, #tpu.memory_space<vmem>>, vector<1x128xf32>,
    return
  }
  func.func @transform_0(%arg0: i32) -> (i32, i32) {
    %c0_i32 = arith.constant 0 : i32
    %c0_i32_0 = arith.constant 0 : i32
    return %arg0, %c0_i32 : i32, i32
  }
  func.func @transform_1(%arg0: i32) -> (i32, i32) {
    %c0_i32 = arith.constant 0 : i32
    %c0_i32_0 = arith.constant 0 : i32
    %c0_i32_1 = arith.constant 0 : i32
    return %c0_i32, %c0_i32_0 : i32, i32
  }
  func.func @transform_2(%arg0: i32) -> (i32, i32) {
    %c0_i32 = arith.constant 0 : i32
    %c0_i32_0 = arith.constant 0 : i32
    %c0_i32_1 = arith.constant 0 : i32
    return %c0_i32, %c0_i32_0 : i32, i32
  }
  func.func @transform_3(%arg0: i32) -> (i32, i32) {
    %c0_i32 = arith.constant 0 : i32
    %c0_i32_0 = arith.constant 0 : i32
    %c0_i32_1 = arith.constant 0 : i32
    return %c0_i32, %c0_i32_0 : i32, i32
  }
  func.func @transform_4(%arg0: i32) -> (i32, i32) {
    %c0_i32 = arith.constant 0 : i32
    %c0_i32_0 = arith.constant 0 : i32
    %c0_i32_1 = arith.constant 0 : i32
    return %c0_i32, %c0_i32_0 : i32, i32
  }
  func.func @transform_5(%arg0: i32) -> (i32, i32) {
    %c0_i32 = arith.constant 0 : i32
    %c0_i32_0 = arith.constant 0 : i32
    return %c0_i32, %arg0 : i32, i32
  }
}

</mosaic_0001>

<bundles_post_ra>
// kernel: tpu_custom_call.1
= control target key start
LH: loop header
LB: loop body
LE: loop exit
PB: predicated region body
PF: predicated region fallthrough
CT: control target
= control target key end

     0   :  { %s1633_s0 = inlined_call_operand.vmem [shape: f32[256,32], index: 0, kind: input, shape index: {}]   ;;  %s1634_s1 = inlined_call_operand.vmem [shape: f32[128,32], index: 1, kind: input, shape index: {}]   ;;  %s1635_s2 = inlined_call_operand.vmem [shape: f32[128,1], index: 2, kind: input, shape index: {}]   ;;  %s1636_s3 = inlined_call_operand.vmem [shape: f32[1,128], index: 3, kind: input, shape index: {}]   ;;  %s1637_s4 = inlined_call_operand.<no memory space> [shape: f32[1,1], index: 4, kind: input, shape index: {}]   ;;  %s1638_s5 = inlined_call_operand.hbm [shape: f32[1,256], index: 5, kind: output, shape index: {}]  }
   0x1   :  { %v10_v0 = vstv %s1637_s4 }
   0x2   :  { %11 = vst [vmem:[#allocation2] sm:$0x1] %v10_v0 }
   0x3   :  { %12 = vsyncpa [#allocation4], 0 }
   0x4   :  { %14 = vsyncpa [#allocation4 + $0x1], 0  ;;  %s1290_s20 = smov 0   ;;  %s1292_s21 = smov 0  }
   0x5   :  { %s1294_s22 = smov 0   ;;  %s1296_s23 = smov 0  }
   0x6 LB: > { %s841_s4 = sadd.s32 4294967295, %s1250_s23   ;;  %s842_s24 = sadd.s32 4294967294, %s1250_s23   ;;  %s1250_s23 = sphi %s1296_s23, %s1646_s23   ;;  %s1246_s22 = sphi %s1294_s22, %s1645_s22   ;;  %s1242_s21 = sphi %s1292_s21, %s1644_s21   ;;  %s1238_s20 = sphi %s1290_s20, %s1643_s20  }
   0x7   : > { %s1313_s25 = sadd.s32 1, %s1250_s23   ;;  %s137_s26 = sadd.s32 1, %s1246_s22 }
   0x8   : > { %s134_s27 = ssub.s32 %s1250_s23, %s1313_s25  ;;  %p147_p0 = scmp.ne.s32.totalorder %s1246_s22, %s1242_s21 }
   0x9   : > { %p135_p1 = scmp.eq.s32.totalorder %s134_s27, 0  ;;  %p148_p2 = scmp.eq.s32.totalorder %s841_s4, 1 }
   0xa   : > { %p153_p3 = scmp.ne.s32.totalorder %s1242_s21, %s1238_s20  ;;  %p154_p4 = scmp.eq.s32.totalorder %s842_s24, 1 }
   0xb   : > { %s1323_s28 = scalar_select %p135_p1, %s1246_s22, %s137_s26  }
   0xc   : > { %p1325_p5 = por %p148_p2, %p147_p0  ;;  %p1329_p6 = por %p154_p4, %p153_p3 }
   0xd   : > { %p845_p7 = scmp.ge.s32.totalorder %s1250_s23, 1  ;;  %p193_p8 = scmp.lt.s32.totalorder %s1250_s23, 3 }
   0xf   : > { %p194_p9 = pnand %p845_p7, %p193_p8 }
  0x10   : > { %s1335_s6 = sshll.u32 (!%p194_p9), %s841_s4, 4  ;;  %vm354_vm0 = vcmask (!%p194_p9), 261120   ;;  %v242_v1 = vld [vmem:[%s1634_s1] sm:$0xff] (!%p194_p9)  ;;  %v1252_v2 = vmov (!%p194_p9), 0   ;;  %v259_v5 = vld [vmem:[%s1635_s2 + $0x8] sm:$0xff] (!%p194_p9)  ;;  %v260_v6 = vld [vmem:[%s1635_s2 + $0x10] sm:$0xff] (!%p194_p9) }
  0x11   : > { %197 = sbr.rel (%p194_p9) target bundleno = 589 (0x24d), region = 40  ;;  %p221_p10 = scmp.lt.s32.totalorder (!%p194_p9), %s1335_s6, 31  ;;  %980 = vmatprep.mubr.msk.f32.mxu0 (!%p194_p9), %vm354_vm0, %v242_v1  ;;  %1154 = vset.pattern.permute.xlu0 (!%p194_p9), %v1252_v2  ;;  %v258_v3 = vld [vmem:[%s1635_s2] sm:$0xff] (!%p194_p9)  ;;  %vm1353_vm1 = vmpackc.low (!%p194_p9), %vm354_vm0, %vm354_vm0  ;;  %v261_v14 = vld [vmem:[%s1635_s2 + $0x18] sm:$0xff] (!%p194_p9)  ;;  %v1253_v60 = vmov (!%p194_p9), 0.0|0.0   ;;  %vm1254_vm2 = vmmov (!%p194_p9), 0  }
  0x12   : > { %1155 = vset.pattern.permute.xlu1 (!%p194_p9), %v1252_v2  ;;  %276 = vperm.xlu0 (!%p194_p9), %1154, %v258_v3   ;;  %v262_v13 = vld [vmem:[%s1635_s2 + $0x20] sm:$0xff] (!%p194_p9)  ;;  %v263_v17 = vld [vmem:[%s1635_s2 + $0x28] sm:$0xff] (!%p194_p9)  ;;  %v264_v18 = vld [vmem:[%s1635_s2 + $0x30] sm:$0xff] (!%p194_p9)  ;;  %v1255_v61 = vmov (!%p194_p9), 0.0   ;;  %s218_s11 = sand.u32 (!%p194_p9), 1, %s1242_s21   ;;  %s1591_s17 = scalar_lea.hbm (!%p194_p9), %s1638_s5, %s1335_s6 }
  0x13   : > { %286 = vperm.xlu1 (!%p194_p9), %1155, %v260_v6   ;;  %v265_v20 = vld [vmem:[%s1635_s2 + $0x38] sm:$0xff] (!%p194_p9)  ;;  %v266_v21 = vld [vmem:[%s1635_s2 + $0x40] sm:$0xff] (!%p194_p9)  ;;  %v267_v24 = vld [vmem:[%s1635_s2 + $0x48] sm:$0xff] (!%p194_p9)  ;;  %1087 = vmatprep.subr.bf16.mxu1 (!%p194_p9), %v1253_v60  ;;  %s219_s12 = scalar_lea.vmem (!%p194_p9), [#allocation3], %s218_s11  ;;  %s1256_s19 = smov (!%p194_p9), [#allocation3]  }
  0x14   : > { %v268_v25 = vld [vmem:[%s1635_s2 + $0x50] sm:$0xff] (!%p194_p9)  ;;  %v269_v27 = vld [vmem:[%s1635_s2 + $0x58] sm:$0xff] (!%p194_p9)  ;;  %v270_v28 = vld [vmem:[%s1635_s2 + $0x60] sm:$0xff] (!%p194_p9)  ;;  %1036 = vmatprep.mubr.msk.f32.mxu1 (!%p194_p9), %vm1254_vm2, %v1255_v61  ;;  %s787_s13 = sshll.u32 (!%p194_p9), %s219_s12, 4  ;;  %s1192_s4 = sshll.u32 (!%p194_p9), %s1256_s19, 4  ;;  %s1593_s13 = int_to_ptr.vmem [resolvable:$true] %s787_s13  ;;  %s1193_s4 = int_to_ptr.vmem [resolvable:$false] %s1192_s4 }
  0x15   : > { %v271_v31 = vld [vmem:[%s1635_s2 + $0x68] sm:$0xff] (!%p194_p9)  ;;  %v272_v32 = vld [vmem:[%s1635_s2 + $0x70] sm:$0xff] (!%p194_p9)  ;;  %v273_v34 = vld [vmem:[%s1635_s2 + $0x78] sm:$0xff] (!%p194_p9)  ;;  %s1188_s18 = scalar_lea.vmem (!%p194_p9), %s1593_s13, 16  ;;  %s1194_s24 = scalar_lea.vmem (!%p194_p9), %s1193_s4, 32 }
  0x16   : > { %281 = vperm.xlu0 (!%p194_p9), %1154, %v259_v5   ;;  %v693_v35 = vld [vmem:[#allocation2] sm:$0x1] (!%p194_p9)  ;;  %v243_v45 = vld [vmem:[%s1634_s1 + $0x8] sm:$0xff] (!%p194_p9)  ;;  %v244_v46 = vld [vmem:[%s1634_s1 + $0x10] sm:$0xff] (!%p194_p9)  ;;  %p1189_p11 = scmp.ne.s32.totalorder (!%p194_p9), %s1593_s13, %s1188_s18  ;;  %p1195_p0 = scmp.lt.s32.totalorder (!%p194_p9), %s1593_s13, %s1193_s4 }
  0x17   : > { %291 = vperm.xlu1 (!%p194_p9), %1155, %v261_v14   ;;  %v245_v47 = vld [vmem:[%s1634_s1 + $0x18] sm:$0xff] (!%p194_p9)  ;;  %v246_v48 = vld [vmem:[%s1634_s1 + $0x20] sm:$0xff] (!%p194_p9)  ;;  %v247_v49 = vld [vmem:[%s1634_s1 + $0x28] sm:$0xff] (!%p194_p9)  ;;  %p1196_p1 = scmp.lt.s32.totalorder (!%p194_p9), %s1194_s24, %s1188_s18 }
  0x18   : > { %s222_s9 = scalar_select %p221_p10, %s1335_s6, 31  ;;  %v248_v50 = vld [vmem:[%s1634_s1 + $0x30] sm:$0xff]  ;;  %v249_v51 = vld [vmem:[%s1634_s1 + $0x38] sm:$0xff]  ;;  %v250_v52 = vld [vmem:[%s1634_s1 + $0x40] sm:$0xff] }
  0x19   : > { %v251_v53 = vld [vmem:[%s1634_s1 + $0x48] sm:$0xff]  ;;  %v252_v54 = vld [vmem:[%s1634_s1 + $0x50] sm:$0xff]  ;;  %v253_v55 = vld [vmem:[%s1634_s1 + $0x58] sm:$0xff]  ;;  %p1190_p12 = pnand %p1189_p11, %p1325_p5  ;;  %p1197_p2 = por %p1196_p1, %p1195_p0 }
  0x1a   : > { %s847_s10 = sshll.u32 %s222_s9, 3  ;;  %296 = vperm.xlu0 %1154, %v262_v13   ;;  %v254_v56 = vld [vmem:[%s1634_s1 + $0x60] sm:$0xff]  ;;  %v255_v57 = vld [vmem:[%s1634_s1 + $0x68] sm:$0xff]  ;;  %v256_v58 = vld [vmem:[%s1634_s1 + $0x70] sm:$0xff] }
  0x1b   : > { %s1349_s15 = scalar_lea.vmem %s1633_s0, %s847_s10  ;;  %301 = vperm.xlu1 %1155, %v263_v17   ;;  %v257_v59 = vld [vmem:[%s1634_s1 + $0x78] sm:$0xff]  ;;  %p1191_p13 = pneg %p1190_p12 }
  0x1c   : > { %v226_v7 = vld [vmem:[%s1349_s15] sm:$0xff]  ;;  %v227_v8 = vld [vmem:[%s1349_s15 + $0x8] sm:$0xff]  ;;  %v228_v9 = vld [vmem:[%s1349_s15 + $0x10] sm:$0xff] }
  0x1d   : > { %v1039_v10 = vpack.c.bf16 %v227_v8, %v226_v7  ;;  %v229_v11 = vld [vmem:[%s1349_s15 + $0x18] sm:$0xff]  ;;  %v230_v15 = vld [vmem:[%s1349_s15 + $0x20] sm:$0xff]  ;;  %v231_v16 = vld [vmem:[%s1349_s15 + $0x28] sm:$0xff]  ;;  %p1198_p3 = pnand %p1197_p2, %p1191_p13 }
  0x1e   : > { %v1045_v12 = vpack.c.bf16 %v229_v11, %v228_v9  ;;  %v1051_v19 = vpack.c.bf16 %v231_v16, %v230_v15  ;;  %306 = vperm.xlu0 %1154, %v264_v18   ;;  %v232_v22 = vld [vmem:[%s1349_s15 + $0x30] sm:$0xff]  ;;  %v233_v23 = vld [vmem:[%s1349_s15 + $0x38] sm:$0xff]  ;;  %v234_v29 = vld [vmem:[%s1349_s15 + $0x40] sm:$0xff] }
  0x1f   : > { %1041 = vmatprep.subr.msk.bf16.mxu0 %vm1353_vm1, %v1039_v10  ;;  %311 = vperm.xlu1 %1155, %v265_v20   ;;  %v1057_v26 = vpack.c.bf16 %v233_v23, %v232_v22  ;;  %v235_v30 = vld [vmem:[%s1349_s15 + $0x48] sm:$0xff]  ;;  %v236_v36 = vld [vmem:[%s1349_s15 + $0x50] sm:$0xff]  ;;  %v237_v37 = vld [vmem:[%s1349_s15 + $0x58] sm:$0xff] }
  0x20   : > { %1044 = vmatpush3.bf16.xpose.msk.msra.mxu0 %vm1353_vm1, %v1039_v10  ;;  %v1063_v33 = vpack.c.bf16 %v235_v30, %v234_v29  ;;  %v1069_v38 = vpack.c.bf16 %v237_v37, %v236_v36  ;;  %v238_v39 = vld [vmem:[%s1349_s15 + $0x60] sm:$0xff]  ;;  %v239_v40 = vld [vmem:[%s1349_s15 + $0x68] sm:$0xff]  ;;  %v240_v42 = vld [vmem:[%s1349_s15 + $0x70] sm:$0xff] }
  0x21   : > { %1047 = vmatprep.subr.msk.bf16.mxu0 %vm1353_vm1, %v1045_v12  ;;  %v1075_v41 = vpack.c.bf16 %v239_v40, %v238_v39  ;;  %v241_v43 = vld [vmem:[%s1349_s15 + $0x78] sm:$0xff]  ;;  %s775_s15 = scalar_lea.sflag [#allocation4], %s218_s11 }
  0x22   : > { %316 = vperm.xlu0 %1154, %v266_v21   ;;  %v1081_v44 = vpack.c.bf16 %v241_v43, %v240_v42 }
  0x23   : > { %321 = vperm.xlu1 %1155, %v267_v24  }
  0x26   : > { %326 = vperm.xlu0 %1154, %v268_v25  }
  0x27   : > { %331 = vperm.xlu1 %1155, %v269_v27  }
  0x28   : > { %1050 = vmatpush3.bf16.xpose.msk.msra.mxu0 %vm1353_vm1, %v1045_v12 }
  0x29   : > { %1053 = vmatprep.subr.msk.bf16.mxu0 %vm1353_vm1, %v1051_v19 }
  0x2a   : > { %336 = vperm.xlu0 %1154, %v270_v28  }
  0x2b   : > { %341 = vperm.xlu1 %1155, %v271_v31  }
  0x2e   : > { %346 = vperm.xlu0 %1154, %v272_v32  }
  0x2f   : > { %351 = vperm.xlu1 %1155, %v273_v34  }
  0x30   : > { %1056 = vmatpush3.bf16.xpose.msk.msra.mxu0 %vm1353_vm1, %v1051_v19 }
  0x31   : > { %1059 = vmatprep.subr.msk.bf16.mxu0 %vm1353_vm1, %v1057_v26 }
  0x32   : > { %696 = vperm.xlu0 %1154, %v693_v35  }
  0x38   : > { %1062 = vmatpush3.bf16.xpose.msk.msra.mxu0 %vm1353_vm1, %v1057_v26 }
  0x39   : > { %1065 = vmatprep.subr.msk.bf16.mxu0 %vm1353_vm1, %v1063_v33 }
  0x40   : > { %1068 = vmatpush3.bf16.xpose.msk.msra.mxu0 %vm1353_vm1, %v1063_v33 }
  0x41   : > { %1071 = vmatprep.subr.msk.bf16.mxu0 %vm1353_vm1, %v1069_v38 }
  0x48   : > { %1074 = vmatpush3.bf16.xpose.msk.msra.mxu0 %vm1353_vm1, %v1069_v38 }
  0x49   : > { %1077 = vmatprep.subr.msk.bf16.mxu0 %vm1353_vm1, %v1075_v41 }
  0x50   : > { %1080 = vmatpush3.bf16.xpose.msk.msra.mxu0 %vm1353_vm1, %v1075_v41 }
  0x51   : > { %1083 = vmatprep.subr.msk.bf16.mxu0 %vm1353_vm1, %v1081_v44 }
  0x58   : > { %1086 = vmatpush3.bf16.xpose.msk.msra.mxu0 %vm1353_vm1, %v1081_v44 }
  0x5f   : > { %981 = vmatmul.mubr.msk.f32.vlgmr.msra.gmra.mrb[0].mxu0 %vm354_vm0, %v243_v45 }
  0x60   : > { %983 = vmatprep.mubr.msk.f32.mxu0 %vm354_vm0, %v244_v46 }
  0x63   : > { %984 = vmatmul.mubr.msk.f32.gmra.mrb[2].mxu0 %vm354_vm0, %v245_v47 }
  0x64   : > { %986 = vmatprep.mubr.msk.f32.mxu0 %vm354_vm0, %v246_v48 }
  0x67   : > { %987 = vmatmul.mubr.msk.f32.gmra.mrb[4].mxu0 %vm354_vm0, %v247_v49 }
  0x68   : > { %989 = vmatprep.mubr.msk.f32.mxu0 %vm354_vm0, %v248_v50 }
  0x6b   : > { %990 = vmatmul.mubr.msk.f32.gmra.mrb[6].mxu0 %vm354_vm0, %v249_v51 }
  0x6c   : > { %992 = vmatprep.mubr.msk.f32.mxu0 %vm354_vm0, %v250_v52 }
  0x6f   : > { %993 = vmatmul.mubr.msk.f32.gmra.mrb[8].mxu0 %vm354_vm0, %v251_v53 }
  0x70   : > { %995 = vmatprep.mubr.msk.f32.mxu0 %vm354_vm0, %v252_v54 }
  0x73   : > { %996 = vmatmul.mubr.msk.f32.gmra.mrb[10].mxu0 %vm354_vm0, %v253_v55 }
  0x74   : > { %998 = vmatprep.mubr.msk.f32.mxu0 %vm354_vm0, %v254_v56 }
  0x77   : > { %999 = vmatmul.mubr.msk.f32.gmra.mrb[12].mxu0 %vm354_vm0, %v255_v57 }
  0x78   : > { %1001 = vmatprep.mubr.msk.f32.mxu0 %vm354_vm0, %v256_v58 }
  0x7b   : > { %1002 = vmatmul.mubr.msk.f32.gmra.mrb[14].mxu0 %vm354_vm0, %v257_v59 }
  0x91   : > { %v277_v63 = vpop.permute.xlu0 %276 }
  0x92   : > { %v287_v62 = vpop.permute.xlu1 %286 }
  0x95   : > { %v282_v1 = vpop.permute.xlu0 %281 }
  0x96   : > { %v292_v0 = vpop.permute.xlu1 %291 }
  0x99   : > { %v297_v3 = vpop.permute.xlu0 %296 }
  0x9a   : > { %v302_v2 = vpop.permute.xlu1 %301 }
  0x9d   : > { %v307_v12 = vpop.permute.xlu0 %306 }
  0x9e   : > { %v312_v9 = vpop.permute.xlu1 %311 }
  0xa1   : > { %v317_v27 = vpop.permute.xlu0 %316 }
  0xa2   : > { %v322_v24 = vpop.permute.xlu1 %321 }
  0xa5   : > { %v327_v41 = vpop.permute.xlu0 %326 }
  0xa6   : > { %v332_v37 = vpop.permute.xlu1 %331 }
  0xaa   : > { %v342_v61 = vpop.permute.xlu1 %341 }
 0x132   : > { %v982_v4 = vpop.f32.mrb[0].mxu0 }
 0x133   : > { %v523_v5 = vadd.f32 %v982_v4, %v282_v1  ;;  %v517_v6 = vpop.f32.mrb[1].mxu0 }
 0x134   : > { %v518_v7 = vadd.f32 %v517_v6, %v277_v63 }
 0x135   : > { %v597_v8 = vmin.f32 %v523_v5, 0.0  ;;  %vm613_vm3 = vcmp.gt.f32.partialorder %v523_v5, 0.0 }
 0x136   : > { %v596_v10 = vmin.f32 %v518_v7, 0.0  ;;  %v985_v11 = vpop.f32.mrb[2].mxu0  ;;  %vm612_vm4 = vcmp.gt.f32.partialorder %v518_v7, 0.0 }
 0x137   : > { %v630_v13 = vmul.f32 1.442695, %v597_v8  ;;  %v1511_v14 = vadd.f32 %v985_v11, %v292_v0  ;;  %v527_v15 = vpop.f32.mrb[3].mxu0 }
 0x138   : > { %v628_v16 = vmul.f32 1.442695, %v596_v10  ;;  %v1513_v17 = vadd.f32 %v527_v15, %v287_v62 }
 0x139   : > { %1156 = vpow2.f32 %v630_v13  ;;  %v599_v18 = vmin.f32 %v1511_v14, 0.0  ;;  %vm615_vm5 = vcmp.gt.f32.partialorder %v1511_v14, 0.0 }
 0x13a   : > { %1158 = vpow2.f32 %v628_v16  ;;  %v598_v19 = vmin.f32 %v1513_v17, 0.0  ;;  %v988_v20 = vpop.f32.mrb[4].mxu0  ;;  %vm614_vm6 = vcmp.gt.f32.partialorder %v1513_v17, 0.0 }
 0x13b   : > { %v634_v21 = vmul.f32 1.442695, %v599_v18  ;;  %v1517_v22 = vadd.f32 %v988_v20, %v302_v2  ;;  %v537_v23 = vpop.f32.mrb[5].mxu0  ;;  %v337_v2 = vpop.permute.xlu0 %336 }
 0x13c   : > { %v632_v25 = vmul.f32 1.442695, %v598_v19  ;;  %v1519_v26 = vadd.f32 %v537_v23, %v297_v3 }
 0x13d   : > { %1160 = vpow2.f32 %v634_v21  ;;  %v601_v28 = vmin.f32 %v1517_v22, 0.0  ;;  %vm617_vm7 = vcmp.gt.f32.partialorder %v1517_v22, 0.0  ;;  %v352_v21 = vpop.permute.xlu1 %351 }
 0x13e   : > { %1162 = vpow2.f32 %v632_v25  ;;  %v600_v29 = vmin.f32 %v1519_v26, 0.0  ;;  %v991_v30 = vpop.f32.mrb[6].mxu0  ;;  %vm616_vm8 = vcmp.gt.f32.partialorder %v1519_v26, 0.0 }
 0x13f   : > { %v638_v31 = vmul.f32 1.442695, %v601_v28  ;;  %v1523_v32 = vadd.f32 %v991_v30, %v312_v9  ;;  %v547_v33 = vpop.f32.mrb[7].mxu0 }
 0x140   : > { %v636_v34 = vmul.f32 1.442695, %v600_v29  ;;  %v1525_v35 = vadd.f32 %v547_v33, %v307_v12 }
 0x141   : > { %1164 = vpow2.f32 %v638_v31  ;;  %v603_v36 = vmin.f32 %v1523_v32, 0.0  ;;  %vm619_vm9 = vcmp.gt.f32.partialorder %v1523_v32, 0.0 }
 0x142   : > { %1166 = vpow2.f32 %v636_v34  ;;  %v602_v38 = vmin.f32 %v1525_v35, 0.0  ;;  %v994_v39 = vpop.f32.mrb[8].mxu0  ;;  %vm618_vm10 = vcmp.gt.f32.partialorder %v1525_v35, 0.0 }
 0x143   : > { %v1157_v40 = vpop.eup %1156  ;;  %v642_v42 = vmul.f32 1.442695, %v603_v36  ;;  %v1529_v43 = vadd.f32 %v994_v39, %v322_v24  ;;  %v557_v44 = vpop.f32.mrb[9].mxu0 }
 0x144   : > { %v1159_v45 = vpop.eup %1158  ;;  %v640_v46 = vmul.f32 1.442695, %v602_v38  ;;  %v1531_v47 = vadd.f32 %v557_v44, %v317_v27  ;;  %v881_v48 = vadd.f32 -1.0, %v1157_v40  ;;  %v347_v27 = vpop.permute.xlu0 %346 }
 0x145   : > { %1168 = vpow2.f32 %v642_v42  ;;  %v605_v49 = vmin.f32 %v1529_v43, 0.0  ;;  %v880_v50 = vadd.f32 -1.0, %v1159_v45  ;;  %vm621_vm11 = vcmp.gt.f32.partialorder %v1529_v43, 0.0 }
 0x146   : > { %1170 = vpow2.f32 %v640_v46  ;;  %v604_v51 = vmin.f32 %v1531_v47, 0.0  ;;  %v997_v52 = vpop.f32.mrb[10].mxu0  ;;  %v677_v53 = vsel %vm613_vm3, %v523_v5, %v881_v48  ;;  %vm620_vm12 = vcmp.gt.f32.partialorder %v1531_v47, 0.0 }
 0x147   : > { %v1161_v54 = vpop.eup %1160  ;;  %v646_v55 = vmul.f32 1.442695, %v605_v49  ;;  %v1535_v56 = vadd.f32 %v997_v52, %v332_v37  ;;  %v567_v57 = vpop.f32.mrb[11].mxu0  ;;  %v676_v58 = vsel %vm612_vm4, %v518_v7, %v880_v50 }
 0x148   : > { %v1163_v59 = vpop.eup %1162  ;;  %v883_v62 = vadd.f32 -1.0, %v1161_v54  ;;  %v644_v63 = vmul.f32 1.442695, %v604_v51  ;;  %v1537_v0 = vadd.f32 %v567_v57, %v327_v41  ;;  %v1088_v1 = vpack.c.bf16 %v677_v53, %v676_v58 }
 0x149   : > { %v882_v3 = vadd.f32 -1.0, %v1163_v59  ;;  %1172 = vpow2.f32 %v646_v55  ;;  %v607_v4 = vmin.f32 %v1535_v56, 0.0  ;;  %vm623_vm13 = vcmp.gt.f32.partialorder %v1535_v56, 0.0 }
 0x14a   : > { %1174 = vpow2.f32 %v644_v63  ;;  %v606_v5 = vmin.f32 %v1537_v0, 0.0  ;;  %v1000_v6 = vpop.f32.mrb[12].mxu0  ;;  %1089 = vmatpush3.bf16.msra.mxu1 %v1088_v1  ;;  %v679_v7 = vsel %vm615_vm5, %v1511_v14, %v883_v62  ;;  %vm622_vm14 = vcmp.gt.f32.partialorder %v1537_v0, 0.0 }
 0x14b   : > { %v1165_v8 = vpop.eup %1164  ;;  %v650_v9 = vmul.f32 1.442695, %v607_v4  ;;  %v1544_v10 = vadd.f32 %v1000_v6, %v342_v61  ;;  %v577_v11 = vpop.f32.mrb[13].mxu0  ;;  %1090 = vmatprep.subr.bf16.mxu1 %v1253_v60  ;;  %v678_v12 = vsel %vm614_vm6, %v1513_v17, %v882_v3 }
 0x14c   : > { %v1167_v13 = vpop.eup %1166  ;;  %v885_v15 = vadd.f32 -1.0, %v1165_v8  ;;  %v648_v16 = vmul.f32 1.442695, %v606_v5  ;;  %v1548_v18 = vadd.f32 %v577_v11, %v337_v2  ;;  %v1091_v19 = vpack.c.bf16 %v679_v7, %v678_v12  ;;  %v692_v8 = vld [vmem:[%s1636_s3] sm:$0x1]  ;;  %v697_v12 = vpop.permute.xlu0 %696 }
 0x14d   : > { %v884_v20 = vadd.f32 -1.0, %v1167_v13  ;;  %1176 = vpow2.f32 %v650_v9  ;;  %v609_v14 = vmin.f32 %v1544_v10, 0.0  ;;  %vm625_vm15 = vcmp.gt.f32.partialorder %v1544_v10, 0.0 }
 0x14e   : > { %1178 = vpow2.f32 %v648_v16  ;;  %v608_v23 = vmin.f32 %v1548_v18, 0.0  ;;  %v1003_v24 = vpop.f32.mrb[14].mxu0  ;;  %1092 = vmatpush3.bf16.msra.mxu1 %v1091_v19  ;;  %v681_v17 = vsel %vm617_vm7, %v1517_v22, %v885_v15  ;;  %vm624_vm0 = vcmp.gt.f32.partialorder %v1548_v18, 0.0 }
 0x14f   : > { %v1169_v25 = vpop.eup %1168  ;;  %v654_v28 = vmul.f32 1.442695, %v609_v14  ;;  %v1555_v29 = vadd.f32 %v1003_v24, %v352_v21  ;;  %v587_v30 = vpop.f32.mrb[15].mxu0  ;;  %1093 = vmatprep.subr.bf16.mxu1 %v1253_v60  ;;  %v680_v31 = vsel %vm616_vm8, %v1519_v26, %v884_v20  ;;  %v699_v9 = vlaneseq }
 0x150   : > { %v1171_v33 = vpop.eup %1170  ;;  %v887_v34 = vadd.f32 -1.0, %v1169_v25  ;;  %v652_v36 = vmul.f32 1.442695, %v608_v23  ;;  %v588_v37 = vadd.f32 %v587_v30, %v347_v27  ;;  %v1094_v38 = vpack.c.bf16 %v681_v17, %v680_v31 }
 0x151   : > { %v886_v39 = vadd.f32 -1.0, %v1171_v33  ;;  %1180 = vpow2.f32 %v654_v28  ;;  %v611_v22 = vmin.f32 %v1555_v29, 0.0  ;;  %vm627_vm1 = vcmp.gt.f32.partialorder %v1555_v29, 0.0 }
 0x152   : > { %1182 = vpow2.f32 %v652_v36  ;;  %v610_v40 = vmin.f32 %v588_v37, 0.0  ;;  %1095 = vmatpush3.bf16.msra.mxu1 %v1094_v38  ;;  %v683_v41 = vsel %vm619_vm9, %v1523_v32, %v887_v34  ;;  %vm626_vm2 = vcmp.gt.f32.partialorder %v588_v37, 0.0 }
 0x153   : > { %v1173_v42 = vpop.eup %1172  ;;  %v658_v26 = vmul.f32 1.442695, %v611_v22  ;;  %1096 = vmatprep.subr.bf16.mxu1 %v1253_v60  ;;  %v682_v44 = vsel %vm618_vm10, %v1525_v35, %v886_v39 }
 0x154   : > { %v1175_v45 = vpop.eup %1174  ;;  %v889_v46 = vadd.f32 -1.0, %v1173_v42  ;;  %v656_v48 = vmul.f32 1.442695, %v610_v40  ;;  %v1097_v49 = vpack.c.bf16 %v683_v41, %v682_v44 }
 0x155   : > { %v888_v50 = vadd.f32 -1.0, %v1175_v45  ;;  %1184 = vpow2.f32 %v658_v26 }
 0x156   : > { %1186 = vpow2.f32 %v656_v48  ;;  %1098 = vmatpush3.bf16.msra.mxu1 %v1097_v49  ;;  %v685_v32 = vsel %vm621_vm11, %v1529_v43, %v889_v46 }
 0x157   : > { %v1177_v51 = vpop.eup %1176  ;;  %1099 = vmatprep.subr.bf16.mxu1 %v1253_v60  ;;  %v684_v52 = vsel %vm620_vm12, %v1531_v47, %v888_v50 }
 0x158   : > { %v1179_v35 = vpop.eup %1178  ;;  %v891_v53 = vadd.f32 -1.0, %v1177_v51  ;;  %v1100_v54 = vpack.c.bf16 %v685_v32, %v684_v52 }
 0x159   : > { %v890_v55 = vadd.f32 -1.0, %v1179_v35 }
 0x15a   : > { %1101 = vmatpush3.bf16.msra.mxu1 %v1100_v54  ;;  %v687_v57 = vsel %vm623_vm13, %v1535_v56, %v891_v53 }
 0x15b   : > { %v1181_v58 = vpop.eup %1180  ;;  %1102 = vmatprep.subr.bf16.mxu1 %v1253_v60  ;;  %v686_v43 = vsel %vm622_vm14, %v1537_v0, %v890_v55 }
 0x15c   : > { %v1183_v59 = vpop.eup %1182  ;;  %v893_v61 = vadd.f32 -1.0, %v1181_v58  ;;  %v1103_v62 = vpack.c.bf16 %v687_v57, %v686_v43 }
 0x15d   : > { %v892_v47 = vadd.f32 -1.0, %v1183_v59 }
 0x15e   : > { %1104 = vmatpush3.bf16.msra.mxu1 %v1103_v62  ;;  %v689_v63 = vsel %vm625_vm15, %v1544_v10, %v893_v61  ;;  %v700_v10 = vshrl.u32 %v699_v9, 7 }
 0x15f   : > { %v1185_v1 = vpop.eup %1184  ;;  %1105 = vmatprep.subr.bf16.mxu1 %v1253_v60  ;;  %v688_v56 = vsel %vm624_vm0, %v1548_v18, %v892_v47 }
 0x160   : > { %v1187_v2 = vpop.eup %1186  ;;  %v895_v3 = vadd.f32 -1.0, %v1185_v1  ;;  %v1106_v0 = vpack.c.bf16 %v689_v63, %v688_v56  ;;  %v701_v11 = vsub.s32 0, %v700_v10 }
 0x161   : > { %v894_v4 = vadd.f32 -1.0, %v1187_v2 }
 0x162   : > { %1107 = vmatpush3.bf16.msra.mxu1 %v1106_v0  ;;  %v691_v5 = vsel %vm627_vm1, %v1555_v29, %v895_v3  ;;  %v702_v13 = vrot.slane %v697_v12, %v701_v11 }
 0x163   : > { %1108 = vmatprep.subr.bf16.mxu1 %v1253_v60  ;;  %v690_v6 = vsel %vm626_vm2, %v588_v37, %v894_v4 }
 0x164   : > { %v1109_v7 = vpack.c.bf16 %v691_v5, %v690_v6 }
 0x166   : > { %1110 = vmatpush3.bf16.msra.mxu1 %v1109_v7 }
 0x169   : > { %1037 = vmatmul.mubr.f32.vlgmr.msra.gmra.mrb[0].mxu1 %v692_v8 }
 0x23c   : > { %v769_v15 = vpop.f32.mrb[0].mxu1 }
 0x23d   : > { %v770_v60 = vadd.f32 %v769_v15, %v702_v13  ;;  %v1038_v16 = vpop.f32.mrb[1].mxu1 }
 0x23f   : > { %773 = vst [vmem:[%s219_s12] sm:$0x1] %v770_v60 }
 0x240   : > { %1201 = shalt.err (!%p1198_p3)
}
 0x241   : > { %s1202_s6 = scalar_lea.hbm %s1591_s17, 16  ;;  %s1206_s7 = scalar_lea.hbm %s1638_s5, 32 }
 0x242   : > { %p1203_p4 = scmp.ne.s32.totalorder %s1591_s17, %s1202_s6  ;;  %p1207_p9 = scmp.lt.u32.totalorder %s1591_s17, %s1638_s5 }
 0x243   : > { %p1208_p10 = scmp.lt.u32.totalorder %s1206_s7, %s1202_s6  ;;  %p1210_p12 = scmp.lt.u32.totalorder %s1202_s6, %s1591_s17 }
 0x244   : > { %p1204_p7 = pnand %p1203_p4, %p1325_p5 }
 0x245   : > { %p1209_p11 = por %p1208_p10, %p1207_p9 }
 0x246   : > { %p1205_p8 = pneg %p1204_p7 }
 0x247   : > { %p1211_p13 = por %p1210_p12, %p1209_p11 }
 0x249   : > { %p1212_p0 = pnand %p1211_p13, %p1205_p8 }
 0x24b   : > { %1215 = shalt.err (!%p1212_p0)
}
 0x24c   : > { %1111 = dma.vmem_to_hbm [thread:$0]  (%p1325_p5), %s1593_s13, 16, %s1591_s17, %s775_s15  }
 0x24d PF: > { %p1117_p1 = scmp.ge.s32.totalorder %s1250_s23, 2  ;;  %s799_s10 = sand.u32 1, %s1238_s20  }
 0x24e   : > { %s800_s11 = scalar_lea.sflag [#allocation4], %s799_s10 }
 0x24f   : > { %p1114_p2 = pnand %p1117_p1, %p1329_p6 }
 0x251   : > { %1233 = dma.done.wait (!%p1114_p2), %s800_s11, 16  }
 0x252   : > { %1235 = vsyncadd (!%p1114_p2), %s800_s11, 4294967280  ;;  %p17_p3 = scmp.ge.s32.totalorder %s1313_s25, 4   ;;  %s1643_s20 = smov %s1242_s21 }
 0x253   : > { %s1644_s21 = smov %s1246_s22  ;;  %s1645_s22 = smov %s1323_s28 }
 0x254   : > { %s1646_s23 = smov %s1313_s25  ;;  %19 = sbr.rel (!%p17_p3) target bundleno = 6 (0x6), region = 75 }
 0x25b   :  { %804 = vsyncpa [#allocation4], 1 }
 0x25c   :  { %806 = vsyncpa [#allocation4 + $0x1], 1 }

</bundles_post_ra>
